<compile_context>
chip_gen: v7x
topology: tpu7x:2x2x1
jax: 0.10.0
libtpu: 0.0.40
codegen_flags: <defaults>
</compile_context>

<pallas_src>
import functools

import jax
import jax.numpy as jnp
import numpy as np
from jax.experimental import pallas as pl
from jax.experimental.pallas import tpu as pltpu

EPS = 1e-5  # torch.nn.InstanceNorm2d default


# ----------------------------- Pallas kernel ---------------------------------
def _deconv_in_act_kernel(z_ref, w_ref, g_ref, beta_ref, o_ref, *, s2, cout, apply_relu):
    """Fused phase-decomposed transposed-conv + InstanceNorm + ReLU for one batch element.

    z_ref:    (1, n_shift*Cin, HW)        shifted (un-dilated) input slabs, lane-dense
    w_ref:    (s2*Cout, n_shift*Cin)      phase-stacked tap weights
    g_ref:    (Cout, 1)                   instance-norm gamma
    beta_ref: (Cout, 1)                   instance-norm beta
    o_ref:    (1, s2*Cout, HW)            phase-stacked output (lane-dense, HW last)
    """
    # Single MXU contraction, fp32 accumulation.
    acc = jnp.dot(w_ref[...], z_ref[0], preferred_element_type=jnp.float32)  # (s2*Cout, HW)
    hw = acc.shape[-1]
    acc3 = acc.reshape(s2, cout, hw)  # tile-aligned split of the sublane dim (free)

    # Single-pass InstanceNorm stats per output channel over all phases x spatial (fp32).
    inv_n = 1.0 / float(s2 * hw)
    sum1 = jnp.sum(acc3, axis=2, keepdims=True)            # (s2, Cout, 1)
    sumsq = jnp.sum(acc3 * acc3, axis=2, keepdims=True)    # (s2, Cout, 1)
    mean = jnp.sum(sum1, axis=0, keepdims=True) * inv_n    # (1, Cout, 1)
    ex2 = jnp.sum(sumsq, axis=0, keepdims=True) * inv_n    # (1, Cout, 1)
    var = ex2 - mean * mean                                # biased, matches torch IN

    gamma = g_ref[...].reshape(1, cout, 1)
    beta = beta_ref[...].reshape(1, cout, 1)
    scale = gamma * jax.lax.rsqrt(var + EPS)               # (1, Cout, 1)
    shift = beta - mean * scale

    y = acc3 * scale + shift                               # one FMA-style epilogue pass
    if apply_relu:
        y = jnp.maximum(y, 0.0)
    o_ref[0] = y.reshape(s2 * cout, hw).astype(o_ref.dtype)


# ------------------------------ glue (JAX) ------------------------------------
def deconv_block_forward(x_nchw, weight, bias, gamma, beta, *, kernel_size, stride,
                         apply_relu=True, compute_dtype=jnp.bfloat16):
    """Forward of the RTNSTV `Deconv` module (padding=1, output_padding=1 fixed).

    x_nchw: (N, Cin, H, W) float32
    weight: (Cin, Cout, k, k)  (PyTorch ConvTranspose2d layout)
    bias:   (Cout,)            NOTE: exactly cancelled by InstanceNorm -> not used.
    gamma, beta: (Cout,)       instance-norm affine params
    returns (N, Cout, Ho, Wo) float32.
    """
    del bias  # mean subtraction in InstanceNorm cancels any per-channel constant exactly.

    n, cin, h, w = x_nchw.shape
    cout = weight.shape[1]
    k, s = kernel_size, stride
    p, op = 1, 1  # fixed by the module
    ho = (h - 1) * s - 2 * p + k + op
    wo = (w - 1) * s - 2 * p + k + op
    if ho % s != 0 or wo % s != 0:
        # TODO(synk): (k-1) % stride != 0 would need per-phase masking of the IN stats.
        raise NotImplementedError("phase decomposition requires (kernel_size - 1) % stride == 0")

    hm, wm = ho // s, wo // s          # per-phase spatial extent
    hw = hm * wm
    s2 = s * s

    # ConvTranspose relation: out[s*m+py, s*j+px] += W[ci,co,ky,kx] * x[ci, m+ey, j+ex]
    # with ky = py + 1 - s*ey, kx = px + 1 - s*ex (padding = 1), x zero outside its extent.
    def shift_set():
        es = set()
        for ph in range(s):
            for kk in range(k):
                if (ph + 1 - kk) % s == 0:
                    es.add((ph + 1 - kk) // s)
        return sorted(es)

    ey_list = shift_set()
    ex_list = shift_set()
    n_shift = len(ey_list) * len(ex_list)

    pad_top = max(0, -min(ey_list))
    pad_left = max(0, -min(ex_list))
    pad_bot = max(0, (hm - 1 + max(ey_list)) - (h - 1))
    pad_right = max(0, (wm - 1 + max(ex_list)) - (w - 1))

    xc = x_nchw.astype(compute_dtype)
    xp = jnp.pad(xc, ((0, 0), (0, 0), (pad_top, pad_bot), (pad_left, pad_right)))

    # RHS: n_shift shifted views of the *un-dilated* input, stacked along channels.
    slabs = []
    for ey in ey_list:
        for ex in ex_list:
            slab = xp[:, :, ey + pad_top:ey + pad_top + hm, ex + pad_left:ex + pad_left + wm]
            slabs.append(slab.reshape(n, cin, hw))
    z = jnp.concatenate(slabs, axis=1)                         # (N, n_shift*Cin, HW)

    # Phase-stacked weight: block (phase, shift) holds the single matching tap (or zero).
    zero_blk = jnp.zeros((cout, cin), weight.dtype)
    rows = []
    for py in range(s):
        for px in range(s):
            blks = []
            for ey in ey_list:
                for ex in ex_list:
                    ky = py + 1 - s * ey
                    kx = px + 1 - s * ex
                    if 0 <= ky < k and 0 <= kx < k:
                        blks.append(weight[:, :, ky, kx].T)    # (Cout, Cin)
                    else:
                        blks.append(zero_blk)
            rows.append(jnp.concatenate(blks, axis=1))         # (Cout, n_shift*Cin)
    w_big = jnp.concatenate(rows, axis=0).astype(compute_dtype)  # (s2*Cout, n_shift*Cin)

    g2 = gamma.reshape(cout, 1).astype(jnp.float32)
    b2 = beta.reshape(cout, 1).astype(jnp.float32)

    itemsize = jnp.dtype(compute_dtype).itemsize
    z_blk = n_shift * cin * hw * itemsize
    w_blk = s2 * cout * n_shift * cin * itemsize
    o_blk = s2 * cout * hw * 4
    need = 2 * z_blk + 2 * w_blk + 2 * o_blk + 4 * o_blk + (1 << 20)
    vmem_limit = int(min(max(2 * need, 32 * 1024 * 1024), 64 * 1024 * 1024))

    cost = pl.CostEstimate(
        flops=2 * n * (s2 * cout) * (n_shift * cin) * hw,
        transcendentals=n * cout,
        bytes_accessed=n * z_blk + w_blk + n * o_blk + 2 * cout * 4,
    )

    kernel = functools.partial(_deconv_in_act_kernel, s2=s2, cout=cout, apply_relu=apply_relu)

    out_flat = pl.pallas_call(
        kernel,
        out_shape=jax.ShapeDtypeStruct((n, s2 * cout, hw), jnp.float32),
        grid=(n,),
        in_specs=[
            pl.BlockSpec((1, n_shift * cin, hw), lambda b: (b, 0, 0)),     # per-batch input
            pl.BlockSpec((s2 * cout, n_shift * cin), lambda b: (0, 0)),    # weights (shared)
            pl.BlockSpec((cout, 1), lambda b: (0, 0)),                     # gamma
            pl.BlockSpec((cout, 1), lambda b: (0, 0)),                     # beta
        ],
        out_specs=pl.BlockSpec((1, s2 * cout, hw), lambda b: (b, 0, 0)),   # lane-dense
        compiler_params=pltpu.CompilerParams(
            dimension_semantics=("parallel",),
            vmem_limit_bytes=vmem_limit),
        cost_estimate=cost,
    )(z, w_big, g2, b2)

    # De-interleave the s*s phases: (N, s, s, Cout, Hm, Wm) -> (N, Cout, Ho, Wo).
    out = out_flat.reshape(n, s, s, cout, hm, wm)
    out = jnp.transpose(out, (0, 3, 4, 1, 5, 2)).reshape(n, cout, ho, wo)
    return out


# --------------------------- pure-JAX reference --------------------------------
def _reference(x, weight, bias, gamma, beta, *, kernel_size, stride, apply_relu=True):
    k = kernel_size
    s = stride
    p, op = 1, 1
    w_conv = jnp.transpose(jnp.flip(weight, axis=(2, 3)), (1, 0, 2, 3))  # (Cout,Cin,k,k)
    pad = (k - 1 - p, k - 1 - p + op)
    y = jax.lax.conv_general_dilated(
        x, w_conv, window_strides=(1, 1), padding=(pad, pad),
        lhs_dilation=(s, s), dimension_numbers=("NCHW", "OIHW", "NCHW"),
        precision=jax.lax.Precision.HIGHEST)
    y = y + bias.reshape(1, -1, 1, 1)
    mean = jnp.mean(y, axis=(2, 3), keepdims=True)
    var = jnp.mean((y - mean) ** 2, axis=(2, 3), keepdims=True)
    y = (y - mean) * jax.lax.rsqrt(var + EPS)
    y = y * gamma.reshape(1, -1, 1, 1) + beta.reshape(1, -1, 1, 1)
    if apply_relu:
        y = jnp.maximum(y, 0.0)
    return y


# --------------------------------- main ----------------------------------------
if __name__ == "__main__":
    # Deconv(in=4, out=8, kernel=3, stride=2, ReLU): 16x16 -> 32x32 (per-phase HW = 256).
    N, CIN, H, W = 2, 4, 16, 16
    COUT, K, STRIDE = 8, 3, 2

    key = jax.random.PRNGKey(0)
    kx, kw, kb, kg, kbeta = jax.random.split(key, 5)

    x = jax.random.normal(kx, (N, CIN, H, W), dtype=jnp.float32)
    weight = 0.1 * jax.random.normal(kw, (CIN, COUT, K, K), dtype=jnp.float32)  # ConvT layout
    bias = 0.1 * jax.random.normal(kb, (COUT,), dtype=jnp.float32)
    gamma = 1.0 + 0.1 * jax.random.normal(kg, (COUT,), dtype=jnp.float32)
    beta = 0.1 * jax.random.normal(kbeta, (COUT,), dtype=jnp.float32)

    ref = _reference(x, weight, bias, gamma, beta,
                     kernel_size=K, stride=STRIDE, apply_relu=True)

    # fp32 compute path: strict numerical check.
    out_f32 = deconv_block_forward(x, weight, bias, gamma, beta,
                                   kernel_size=K, stride=STRIDE, apply_relu=True,
                                   compute_dtype=jnp.float32)
    out_f32 = jax.block_until_ready(out_f32)
    np.testing.assert_allclose(np.asarray(out_f32), np.asarray(ref), atol=3e-4, rtol=3e-4)

    # Default bf16 compute path (MXU-native on v6e/v7x; fp32 accumulation + IN stats).
    out_bf16 = deconv_block_forward(x, weight, bias, gamma, beta,
                                    kernel_size=K, stride=STRIDE, apply_relu=True)
    out_bf16 = jax.block_until_ready(out_bf16)
    np.testing.assert_allclose(np.asarray(out_bf16), np.asarray(ref), atol=8e-2, rtol=8e-2)

    print("KERNEL_OK")
</pallas_src>

<mosaic_0001>
module attributes {stable_mosaic.version = 11 : i64} {
  func.func @_deconv_in_act_kernel(%arg0: i32, %arg1: memref<1x16x256xf32, #tpu.memory_space<vmem>>, %arg2: memref<32x16xf32, #tpu.memory_space<vmem>>, %arg3: memref<8x1xf32, #tpu.memory_space<vmem>>, %arg4: memref<8x1xf32, #tpu.memory_space<vmem>>, %arg5: memref<1x32x256xf32, #tpu.memory_space<vmem>>) attributes {dimension_semantics = [#tpu.dimension_semantics<parallel>], iteration_bounds = array<i64: 2>, scalar_prefetch = 0 : i64, scratch_operands = 0 : i64, tpu.core_type = #tpu.core_type<tc>, window_params = [{transform_indices = @transform_0, window_bounds = array<i64: 1, 16, 256>}, {pipeline_mode = #tpu.pipeline_mode<synchronous>, transform_indices = @transform_1, window_bounds = array<i64: 32, 16>}, {pipeline_mode = #tpu.pipeline_mode<synchronous>, transform_indices = @transform_2, window_bounds = array<i64: 8, 1>}, {pipeline_mode = #tpu.pipeline_mode<synchronous>, transform_indices = @transform_3, window_bounds = array<i64: 8, 1>}, {transform_indices = @transform_4, window_bounds = array<i64: 1, 32, 256>}]} {
    %c0 = arith.constant 0 : index
    %c0_0 = arith.constant 0 : index
    %0 = vector.load %arg2[%c0, %c0_0] : memref<32x16xf32, #tpu.memory_space<vmem>>, vector<32x16xf32>
    %c0_1 = arith.constant 0 : index
    %c0_2 = arith.constant 0 : index
    %c0_3 = arith.constant 0 : index
    %1 = vector.load %arg1[%c0_1, %c0_2, %c0_3] : memref<1x16x256xf32, #tpu.memory_space<vmem>>, vector<1x16x256xf32>
    %2 = vector.shape_cast %1 : vector<1x16x256xf32> to vector<16x256xf32>
    %cst = arith.constant dense<0.000000e+00> : vector<32x256xf32>
    %3 = tpu.matmul %0, %2, %cst {dimension_numbers = #tpu.dot_dimension_numbers<[1], [0], [0], [1], [0, 0, 1, 1], [], []>} : vector<32x16xf32>, vector<16x256xf32>, vector<32x256xf32> -> vector<32x256xf32>
    %4 = vector.shape_cast %3 : vector<32x256xf32> to vector<4x8x256xf32>
    %cst_4 = arith.constant dense<0.000000e+00> : vector<4x8xf32>
    %5 = vector.multi_reduction <add>, %4, %cst_4 [2] : vector<4x8x256xf32> to vector<4x8xf32>
    %6 = vector.shape_cast %5 : vector<4x8xf32> to vector<4x8x1xf32>
    %7 = arith.mulf %4, %4 : vector<4x8x256xf32>
    %cst_5 = arith.constant dense<0.000000e+00> : vector<4x8xf32>
    %8 = vector.multi_reduction <add>, %7, %cst_5 [2] : vector<4x8x256xf32> to vector<4x8xf32>
    %9 = vector.shape_cast %8 : vector<4x8xf32> to vector<4x8x1xf32>
    %cst_6 = arith.constant dense<0.000000e+00> : vector<8x1xf32>
    %10 = vector.multi_reduction <add>, %6, %cst_6 [0] : vector<4x8x1xf32> to vector<8x1xf32>
    %11 = vector.shape_cast %10 : vector<8x1xf32> to vector<1x8x1xf32>
    %cst_7 = arith.constant 9.765625E-4 : f32
    %12 = vector.broadcast %cst_7 : f32 to vector<1x8x1xf32>
    %13 = arith.mulf %11, %12 : vector<1x8x1xf32>
    %cst_8 = arith.constant dense<0.000000e+00> : vector<8x1xf32>
    %14 = vector.multi_reduction <add>, %9, %cst_8 [0] : vector<4x8x1xf32> to vector<8x1xf32>
    %15 = vector.shape_cast %14 : vector<8x1xf32> to vector<1x8x1xf32>
    %cst_9 = arith.constant 9.765625E-4 : f32
    %16 = vector.broadcast %cst_9 : f32 to vector<1x8x1xf32>
    %17 = arith.mulf %15, %16 : vector<1x8x1xf32>
    %18 = arith.mulf %13, %13 : vector<1x8x1xf32>
    %19 = arith.subf %17, %18 : vector<1x8x1xf32>
    %c0_10 = arith.constant 0 : index
    %c0_11 = arith.constant 0 : index
    %20 = vector.load %arg3[%c0_10, %c0_11] : memref<8x1xf32, #tpu.memory_space<vmem>>, vector<8x1xf32>
    %21 = vector.shape_cast %20 : vector<8x1xf32> to vector<1x8x1xf32>
    %c0_12 = arith.constant 0 : index
    %c0_13 = arith.constant 0 : index
    %22 = vector.load %arg4[%c0_12, %c0_13] : memref<8x1xf32, #tpu.memory_space<vmem>>, vector<8x1xf32>
    %23 = vector.shape_cast %22 : vector<8x1xf32> to vector<1x8x1xf32>
    %cst_14 = arith.constant 9.99999974E-6 : f32
    %24 = vector.broadcast %cst_14 : f32 to vector<1x8x1xf32>
    %25 = arith.addf %19, %24 : vector<1x8x1xf32>
    %26 = math.rsqrt %25 : vector<1x8x1xf32>
    %27 = arith.mulf %21, %26 : vector<1x8x1xf32>
    %28 = arith.mulf %13, %27 : vector<1x8x1xf32>
    %29 = arith.subf %23, %28 : vector<1x8x1xf32>
    %30 = vector.broadcast %27 : vector<1x8x1xf32> to vector<4x8x256xf32>
    %31 = arith.mulf %4, %30 : vector<4x8x256xf32>
    %32 = vector.broadcast %29 : vector<1x8x1xf32> to vector<4x8x256xf32>
    %33 = arith.addf %31, %32 : vector<4x8x256xf32>
    %cst_15 = arith.constant 0.000000e+00 : f32
    %34 = vector.broadcast %cst_15 : f32 to vector<4x8x256xf32>
    %35 = arith.maximumf %33, %34 : vector<4x8x256xf32>
    %36 = vector.shape_cast %35 : vector<4x8x256xf32> to vector<32x256xf32>
    %c0_16 = arith.constant 0 : index
    %c0_17 = arith.constant 0 : index
    %c0_18 = arith.constant 0 : index
    %37 = vector.load %arg5[%c0_16, %c0_17, %c0_18] : memref<1x32x256xf32, #tpu.memory_space<vmem>>, vector<1x32x256xf32>
    %38 = vector.shape_cast %37 : vector<1x32x256xf32> to vector<32x256xf32>
    %39 = vector.shape_cast %36 : vector<32x256xf32> to vector<1x32x256xf32>
    tpu.vector_store %arg5[%c0_16, %c0_17, %c0_18], %39 {strides = array<i32>} : memref<1x32x256xf32, #tpu.memory_space<vmem>>, vector<1x32x256xf32>,
    return
  }
  func.func @transform_0(%arg0: i32) -> (i32, i32, i32) {
    %c0_i32 = arith.constant 0 : i32
    %c0_i32_0 = arith.constant 0 : i32
    %c0_i32_1 = arith.constant 0 : i32
    return %arg0, %c0_i32, %c0_i32_0 : i32, i32, i32
  }
  func.func @transform_1(%arg0: i32) -> (i32, i32) {
    %c0_i32 = arith.constant 0 : i32
    %c0_i32_0 = arith.constant 0 : i32
    %c0_i32_1 = arith.constant 0 : i32
    return %c0_i32, %c0_i32_0 : i32, i32
  }
  func.func @transform_2(%arg0: i32) -> (i32, i32) {
    %c0_i32 = arith.constant 0 : i32
    %c0_i32_0 = arith.constant 0 : i32
    %c0_i32_1 = arith.constant 0 : i32
    return %c0_i32, %c0_i32_0 : i32, i32
  }
  func.func @transform_3(%arg0: i32) -> (i32, i32) {
    %c0_i32 = arith.constant 0 : i32
    %c0_i32_0 = arith.constant 0 : i32
    %c0_i32_1 = arith.constant 0 : i32
    return %c0_i32, %c0_i32_0 : i32, i32
  }
  func.func @transform_4(%arg0: i32) -> (i32, i32, i32) {
    %c0_i32 = arith.constant 0 : i32
    %c0_i32_0 = arith.constant 0 : i32
    %c0_i32_1 = arith.constant 0 : i32
    return %arg0, %c0_i32, %c0_i32_0 : i32, i32, i32
  }
}

</mosaic_0001>

<bundles_post_ra>
// kernel: tpu_custom_call.1
= control target key start
LH: loop header
LB: loop body
LE: loop exit
PB: predicated region body
PF: predicated region fallthrough
CT: control target
= control target key end

     0   :  { %9 = vsyncpa [#allocation3], 0  ;;  %s787_s0 = inlined_call_operand.vmem [shape: f32[2,16,256], index: 0, kind: input, shape index: {}]   ;;  %s788_s1 = inlined_call_operand.vmem [shape: f32[32,16], index: 1, kind: input, shape index: {}]   ;;  %s789_s2 = inlined_call_operand.vmem [shape: f32[8,1], index: 2, kind: input, shape index: {}]   ;;  %s790_s3 = inlined_call_operand.vmem [shape: f32[8,1], index: 3, kind: input, shape index: {}]   ;;  %s791_s4 = inlined_call_operand.hbm [shape: f32[2,32,256], index: 4, kind: output, shape index: {}]  }
   0x1   :  { %11 = vsyncpa [#allocation3 + $0x1], 0  ;;  %s638_s15 = smov 0   ;;  %s640_s16 = smov 0  }
   0x2   :  { %s642_s17 = smov 0   ;;  %s644_s18 = smov 0  }
   0x3 LB: > { %s659_s19 = sadd.s32 4294967295, %s606_s18   ;;  %s473_s20 = sadd.s32 4294967294, %s606_s18   ;;  %s606_s18 = sphi %s644_s18, %s797_s18   ;;  %s602_s17 = sphi %s642_s17, %s796_s17   ;;  %s598_s16 = sphi %s640_s16, %s795_s16   ;;  %s594_s15 = sphi %s638_s15, %s794_s15  }
   0x4   : > { %s663_s21 = sadd.s32 1, %s606_s18   ;;  %s113_s22 = sadd.s32 1, %s602_s17 }
   0x5   : > { %s110_s23 = ssub.s32 %s606_s18, %s663_s21  ;;  %p123_p0 = scmp.ne.s32.totalorder %s602_s17, %s598_s16 }
   0x6   : > { %p111_p1 = scmp.eq.s32.totalorder %s110_s23, 0  ;;  %p124_p2 = scmp.eq.s32.totalorder %s659_s19, 1 }
   0x7   : > { %p129_p3 = scmp.ne.s32.totalorder %s598_s16, %s594_s15  ;;  %p130_p4 = scmp.eq.s32.totalorder %s473_s20, 1 }
   0x8   : > { %s674_s24 = scalar_select %p111_p1, %s602_s17, %s113_s22  }
   0x9   : > { %p676_p5 = por %p124_p2, %p123_p0  ;;  %p680_p6 = por %p130_p4, %p129_p3 }
   0xa   : > { %p476_p7 = scmp.ge.s32.totalorder %s606_s18, 1  ;;  %p165_p8 = scmp.lt.s32.totalorder %s606_s18, 3 }
   0xc   : > { %p166_p9 = pnand %p476_p7, %p165_p8 }
   0xd   : > { %p191_p10 = scmp.lt.s32.totalorder (!%p166_p9), %s659_s19, 1  ;;  %v608_v0 = vmov (!%p166_p9), 0.0   ;;  %v196_v7 = vld [vmem:[%s788_s1] sm:$0xff] (!%p166_p9)  ;;  %vm204_vm0 = vcmask (!%p166_p9), 130048   ;;  %v198_v8 = vld [vmem:[%s788_s1 + $0x10] sm:$0xff] (!%p166_p9)  ;;  %v197_v9 = vld [vmem:[%s788_s1 + $0x8] sm:$0xff] (!%p166_p9) }
   0xe   : > { %169 = sbr.rel (%p166_p9) target bundleno = 578 (0x242), region = 36  ;;  %281 = vmatprep.mubr.f32.mxu0 (!%p166_p9), %v608_v0  ;;  %293 = vmatprep.mubr.f32.mxu1 (!%p166_p9), %v608_v0  ;;  %v199_v10 = vld [vmem:[%s788_s1 + $0x18] sm:$0xff] (!%p166_p9)  ;;  %v609_v35 = vmov (!%p166_p9), 0   ;;  %v348_v55 = vld [vmem:[%s789_s2] sm:$0xff] (!%p166_p9)  ;;  %s490_s29 = sshll.u32 (!%p166_p9), %s659_s19, 10 }
   0xf   : > { %540 = vset.pattern.permute.xlu0 (!%p166_p9), %v609_v35  ;;  %541 = vset.pattern.permute.xlu1 (!%p166_p9), %v609_v35  ;;  %v349_v58 = vld [vmem:[%s790_s3] sm:$0xff] (!%p166_p9)  ;;  %s740_s8 = scalar_lea.hbm (!%p166_p9), %s791_s4, %s490_s29  ;;  %s610_s10 = smov (!%p166_p9), [#allocation2]  }
  0x10   : > { %s548_s11 = sshll.u32 (!%p166_p9), %s610_s10, 4  ;;  %s549_s11 = int_to_ptr.vmem [resolvable:$false] %s548_s11 }
  0x11   : > { %s550_s12 = scalar_lea.vmem (!%p166_p9), %s549_s11, 2048 }
  0x15   : > { %s192_s27 = scalar_select %p191_p10, %s659_s19, 1 }
  0x17   : > { %s489_s28 = sshll.u32 %s192_s27, 5  ;;  %s188_s27 = sand.u32 1, %s598_s16  }
  0x18   : > { %s195_s5 = scalar_lea.vmem %s787_s0, %s489_s28  ;;  %s477_s28 = sshll.u32 %s188_s27, 6 }
  0x19   : > { %v201_v1 = vld [vmem:[%s195_s5 + $0x8] sm:$0xff]  ;;  %v203_v2 = vld [vmem:[%s195_s5 + $0x18] sm:$0xff]  ;;  %v200_v3 = vld [vmem:[%s195_s5] sm:$0xff]  ;;  %s190_s30 = scalar_lea.vmem [#allocation2], %s477_s28  ;;  %s746_s19 = scalar_lea.sflag [#allocation3], %s188_s27 }
  0x1a   : > { %v491_v4 = vpack.c.bf16 %v203_v2, %v201_v1  ;;  %v202_v5 = vld [vmem:[%s195_s5 + $0x10] sm:$0xff]  ;;  %s411_s5 = sshll.u32 %s190_s30, 4  ;;  %s742_s5 = int_to_ptr.vmem [resolvable:$true] %s411_s5 }
  0x1b   : > { %v493_v6 = vpack.c.bf16 %v202_v5, %v200_v3  ;;  %s544_s9 = scalar_lea.vmem %s742_s5, 1024  ;;  %p551_p0 = scmp.lt.s32.totalorder %s742_s5, %s549_s11 }
  0x1c   : > { %492 = vmatprep.subr.bf16.mxu0 %v491_v4  ;;  %495 = vmatprep.subr.bf16.mxu1 %v491_v4  ;;  %p545_p11 = scmp.ne.s32.totalorder %s742_s5, %s544_s9  ;;  %p552_p1 = scmp.lt.s32.totalorder %s550_s12, %s544_s9 }
  0x1d   : > { %494 = vmatpush1.bf16.msra.mxu0 %v493_v6  ;;  %496 = vmatpush1.bf16.msra.mxu1 %v493_v6 }
  0x1e   : > { %p546_p12 = pnand %p545_p11, %p676_p5  ;;  %p553_p2 = por %p552_p1, %p551_p0 }
  0x20   : > { %480 = vmatmul.mubr.msk.f32.vlgmr.msra.gmra.mrb[0].mxu0 %vm204_vm0, %v196_v7  ;;  %482 = vmatmul.mubr.msk.f32.vlgmr.msra.gmra.mrb[0].mxu1 %vm204_vm0, %v198_v8  ;;  %p547_p13 = pneg %p546_p12 }
  0x21   : > { %287 = vmatprep.mubr.f32.mxu0 %v608_v0  ;;  %299 = vmatprep.mubr.f32.mxu1 %v608_v0 }
  0x22   : > { %p554_p3 = pnand %p553_p2, %p547_p13 }
  0x24   : > { %481 = vmatmul.mubr.msk.f32.gmra.mrb[2].mxu0 %vm204_vm0, %v197_v9  ;;  %483 = vmatmul.mubr.msk.f32.gmra.mrb[2].mxu1 %vm204_vm0, %v199_v10 }
  0xf3   : > { %v703_v11 = vpop.f32.mrb[0].mxu0  ;;  %v705_v12 = vpop.f32.mrb[0].mxu1 }
  0xf4   : > { %v707_v13 = vpop.f32.mrb[1].mxu0  ;;  %v709_v14 = vpop.f32.mrb[1].mxu1  ;;  %v318_v15 = vmul.f32 %v703_v11, %v703_v11  ;;  %v322_v16 = vmul.f32 %v705_v12, %v705_v12 }
  0xf5   : > { %v312_v17 = vadd.f32 %v709_v14, %v705_v12  ;;  %v306_v18 = vadd.f32 %v707_v13, %v703_v11  ;;  %v319_v19 = vmul.f32 %v707_v13, %v707_v13  ;;  %v323_v20 = vmul.f32 %v709_v14, %v709_v14 }
  0xf7   : > { %313 = vadd.xlane.f32.xlu1 %v312_v17  ;;  %307 = vadd.xlane.f32.xlu0 %v306_v18  ;;  %v289_v21 = vpop.f32.mrb[2].mxu0  ;;  %v301_v22 = vpop.f32.mrb[2].mxu1  ;;  %v326_v23 = vadd.f32 %v319_v19, %v318_v15  ;;  %v332_v24 = vadd.f32 %v323_v20, %v322_v16 }
  0xf8   : > { %v291_v25 = vpop.f32.mrb[3].mxu0  ;;  %v303_v26 = vpop.f32.mrb[3].mxu1  ;;  %v320_v27 = vmul.f32 %v289_v21, %v289_v21  ;;  %v324_v28 = vmul.f32 %v301_v22, %v301_v22 }
  0xf9   : > { %v321_v29 = vmul.f32 %v291_v25, %v291_v25  ;;  %v309_v30 = vadd.f32 %v291_v25, %v289_v21  ;;  %v325_v31 = vmul.f32 %v303_v26, %v303_v26  ;;  %v315_v32 = vadd.f32 %v303_v26, %v301_v22 }
  0xfb   : > { %327 = vadd.xlane.f32.xlu1 %v326_v23  ;;  %310 = vadd.xlane.f32.xlu0 %v309_v30  ;;  %v329_v33 = vadd.f32 %v321_v29, %v320_v27  ;;  %v335_v34 = vadd.f32 %v325_v31, %v324_v28 }
  0xff   : > { %316 = vadd.xlane.f32.xlu1 %v315_v32  ;;  %330 = vadd.xlane.f32.xlu0 %v329_v33 }
 0x103   : > { %336 = vadd.xlane.f32.xlu1 %v335_v34  ;;  %333 = vadd.xlane.f32.xlu0 %v332_v24 }
 0x184   : > { %v314_v36 = vpop.xlane.xlu1 %313  ;;  %v308_v37 = vpop.xlane.xlu0 %307 }
 0x188   : > { %v328_v38 = vpop.xlane.xlu1 %327  ;;  %v311_v39 = vpop.xlane.xlu0 %310 }
 0x189   : > { %v338_v40 = vadd.f32 %v311_v39, %v308_v37 }
 0x18b   : > { %v339_v41 = vadd.f32 %v338_v40, %v314_v36 }
 0x18c   : > { %v317_v42 = vpop.xlane.xlu1 %316  ;;  %v331_v43 = vpop.xlane.xlu0 %330 }
 0x18d   : > { %v340_v44 = vadd.f32 %v339_v41, %v317_v42  ;;  %v342_v45 = vadd.f32 %v331_v43, %v328_v38 }
 0x18f   : > { %v341_v47 = vmul.f32 0.0009765625, %v340_v44 }
 0x190   : > { %v334_v46 = vpop.xlane.xlu0 %333  ;;  %v337_v49 = vpop.xlane.xlu1 %336 }
 0x191   : > { %v343_v48 = vadd.f32 %v342_v45, %v334_v46  ;;  %v346_v51 = vmul.f32 %v341_v47, %v341_v47 }
 0x193   : > { %v344_v50 = vadd.f32 %v343_v48, %v337_v49 }
 0x195   : > { %v345_v52 = vmul.f32 0.0009765625, %v344_v50 }
 0x197   : > { %v347_v53 = vsub.f32 %v345_v52, %v346_v51 }
 0x199   : > { %v350_v54 = vadd.f32 1e-05, %v347_v53 }
 0x19b   : > { %542 = vrsqrt.f32 %v350_v54 }
 0x1a5   : > { %v543_v56 = vpop.eup %542 }
 0x1a6   : > { %v352_v57 = vmul.f32 %v543_v56, %v348_v55 }
 0x1a8   : > { %357 = vperm.xlu0 %540, %v352_v57   ;;  %v353_v59 = vmul.f32 %v352_v57, %v341_v47 }
 0x1aa   : > { %v354_v60 = vsub.f32 %v349_v58, %v353_v59 }
 0x1ac   : > { %370 = vperm.xlu1 %541, %v354_v60  }
 0x227   : > { %v358_v61 = vpop.permute.xlu0 %357 }
 0x228   : > { %v360_v62 = vmul.f32 %v358_v61, %v703_v11  ;;  %v361_v63 = vmul.f32 %v358_v61, %v707_v13  ;;  %v362_v0 = vmul.f32 %v358_v61, %v289_v21  ;;  %v363_v1 = vmul.f32 %v358_v61, %v291_v25 }
 0x229   : > { %v364_v2 = vmul.f32 %v358_v61, %v705_v12  ;;  %v365_v3 = vmul.f32 %v358_v61, %v709_v14  ;;  %v366_v4 = vmul.f32 %v358_v61, %v301_v22  ;;  %v367_v5 = vmul.f32 %v358_v61, %v303_v26 }
 0x22b   : > { %v371_v6 = vpop.permute.xlu1 %370 }
 0x22c   : > { %v373_v7 = vadd.f32 %v371_v6, %v360_v62  ;;  %v374_v8 = vadd.f32 %v371_v6, %v361_v63  ;;  %v375_v9 = vadd.f32 %v371_v6, %v362_v0  ;;  %v376_v10 = vadd.f32 %v371_v6, %v363_v1 }
 0x22d   : > { %v377_v15 = vadd.f32 %v371_v6, %v364_v2  ;;  %v378_v11 = vadd.f32 %v371_v6, %v365_v3  ;;  %v379_v16 = vadd.f32 %v371_v6, %v366_v4  ;;  %v380_v13 = vadd.f32 %v371_v6, %v367_v5 }
 0x22e   : > { %v381_v17 = vmax.f32 %v373_v7, 0.0  ;;  %v382_v18 = vmax.f32 %v374_v8, 0.0  ;;  %v383_v19 = vmax.f32 %v375_v9, 0.0  ;;  %v384_v12 = vmax.f32 %v376_v10, 0.0 }
 0x22f   : > { %v385_v14 = vmax.f32 %v377_v15, 0.0  ;;  %v386_v20 = vmax.f32 %v378_v11, 0.0  ;;  %v387_v21 = vmax.f32 %v379_v16, 0.0  ;;  %v388_v22 = vmax.f32 %v380_v13, 0.0 }
 0x230   : > { %389 = vst [vmem:[%s190_s30] sm:$0xff] %v381_v17  ;;  %390 = vst [vmem:[%s190_s30 + $0x8] sm:$0xff] %v382_v18 }
 0x231   : > { %391 = vst [vmem:[%s190_s30 + $0x10] sm:$0xff] %v383_v19  ;;  %392 = vst [vmem:[%s190_s30 + $0x18] sm:$0xff] %v384_v12 }
 0x232   : > { %393 = vst [vmem:[%s190_s30 + $0x20] sm:$0xff] %v385_v14  ;;  %394 = vst [vmem:[%s190_s30 + $0x28] sm:$0xff] %v386_v20 }
 0x233   : > { %395 = vst [vmem:[%s190_s30 + $0x30] sm:$0xff] %v387_v21  ;;  %396 = vst [vmem:[%s190_s30 + $0x38] sm:$0xff] %v388_v22 }
 0x234   : > { %557 = shalt.err (!%p554_p3)
}
 0x235   : > { %s558_s13 = scalar_lea.hbm %s740_s8, 1024  ;;  %s562_s22 = scalar_lea.hbm %s791_s4, 2048 }
 0x236   : > { %p559_p4 = scmp.ne.s32.totalorder %s740_s8, %s558_s13  ;;  %p563_p9 = scmp.lt.u32.totalorder %s740_s8, %s791_s4 }
 0x237   : > { %p564_p10 = scmp.lt.u32.totalorder %s562_s22, %s558_s13  ;;  %p566_p12 = scmp.lt.u32.totalorder %s558_s13, %s740_s8 }
 0x238   : > { %p560_p7 = pnand %p559_p4, %p676_p5 }
 0x239   : > { %p565_p11 = por %p564_p10, %p563_p9 }
 0x23a   : > { %p561_p8 = pneg %p560_p7 }
 0x23b   : > { %p567_p13 = por %p566_p12, %p565_p11 }
 0x23d   : > { %p568_p0 = pnand %p567_p13, %p561_p8 }
 0x23f   : > { %571 = shalt.err (!%p568_p0)
}
 0x240   : > { %s611_s28 = smov 256   ;;  %s612_s29 = smov 16  }
 0x241   : > { %497 = dma.vmem_to_hbm [thread:$0]  (%p676_p5), %s742_s5, 1024, %s740_s8, %s746_s19, %s611_s28, %s611_s28, %s612_s29  }
 0x242 PF: > { %p503_p1 = scmp.ge.s32.totalorder %s606_s18, 2  ;;  %s426_s30 = sand.u32 1, %s594_s15  }
 0x243   : > { %s427_s6 = scalar_lea.sflag [#allocation3], %s426_s30 }
 0x244   : > { %p500_p2 = pnand %p503_p1, %p680_p6 }
 0x246   : > { %589 = dma.done.wait (!%p500_p2), %s427_s6, 1024  }
 0x247   : > { %591 = vsyncadd (!%p500_p2), %s427_s6, 4294966272  ;;  %p14_p3 = scmp.ge.s32.totalorder %s663_s21, 4   ;;  %s794_s15 = smov %s598_s16 }
 0x248   : > { %s795_s16 = smov %s602_s17  ;;  %s796_s17 = smov %s674_s24 }
 0x249   : > { %s797_s18 = smov %s663_s21  ;;  %16 = sbr.rel (!%p14_p3) target bundleno = 3 (0x3), region = 71 }
 0x250   :  { %432 = vsyncpa [#allocation3], 1 }
 0x251   :  { %434 = vsyncpa [#allocation3 + $0x1], 1 }

</bundles_post_ra>
